<compile_context>
chip_gen: v7x
topology: tpu7x:2x2x1
jax: 0.10.0
libtpu: 0.0.40
codegen_flags: <defaults>
</compile_context>

<pallas_src>
import functools

import jax
import jax.numpy as jnp
from jax import lax
from jax.experimental import pallas as pl
from jax.experimental.pallas import tpu as pltpu


def pam_kernel(gamma_ref, w_ref, b_ref, x_ref, o_ref, qkv_ref, *, cq_pad):
    """One (batch, query-tile) grid cell of position attention.

    x_ref:   (C, HW)  native dtype, full spatial extent for this batch
    qkv_ref: (2*cq_pad + C + 1, HW) bf16 scratch, persistent across qi
             rows [0, cq_pad)            : Q  (zero-padded channels)
             rows [cq_pad, 2*cq_pad)      : K  (zero-padded channels)
             rows [2*cq_pad, 2*cq_pad+C)  : V
             row   2*cq_pad + C           : all-ones (softmax denominator)
    o_ref:   (C, TQ) output tile (lane-dense, TQ multiple of 128)
    """
    C, HW = x_ref.shape
    _, TQ = o_ref.shape
    qi = pl.program_id(1)

    # ---- Hoisted fused projection: once per batch (qi == 0). -------------
    @pl.when(qi == 0)
    def _():
        xb = x_ref[...].astype(jnp.bfloat16)                       # (C, HW)
        proj = jnp.dot(w_ref[...], xb,
                       preferred_element_type=jnp.float32) + b_ref[...]
        qkv_ref[...] = proj.astype(jnp.bfloat16)

    # ---- Per-query-tile attention. ----------------------------------------
    start = pl.multiple_of(qi * TQ, TQ)                            # TQ % 128 == 0
    q = qkv_ref[pl.ds(0, cq_pad), pl.ds(start, TQ)]                # (Cq_pad, TQ) bf16
    k = qkv_ref[pl.ds(cq_pad, cq_pad), :]                          # (Cq_pad, HW) bf16
    v_aug = qkv_ref[pl.ds(2 * cq_pad, C + 1), :]                   # (C+1, HW)   bf16

    # energy[i, j] = sum_c q[c, i] * k[c, j]   (padded channels are zero)
    energy = lax.dot_general(q, k, (((0,), (0,)), ((), ())),
                             preferred_element_type=jnp.float32)   # (TQ, HW)

    # Max-stabilized, UN-normalized softmax weights (bf16 operands for MXU).
    m = jnp.max(energy, axis=-1, keepdims=True)
    p = jnp.exp(energy - m).astype(jnp.bfloat16)                   # (TQ, HW)

    # out_aug[c, i] = sum_j v_aug[c, j] * p[i, j]; last row = sum_j p[i, j].
    out_aug = lax.dot_general(v_aug, p, (((1,), (1,)), ((), ())),
                              preferred_element_type=jnp.float32)  # (C+1, TQ)
    numer = out_aug[:C, :]                                         # (C, TQ)
    inv_l = pl.reciprocal(out_aug[C:C + 1, :], approx=True)        # (1, TQ), EUP

    gamma = gamma_ref[0]                                           # scalar (SMEM)
    x_q = x_ref[:, pl.ds(start, TQ)].astype(jnp.float32)           # residual tile
    o_ref[...] = (numer * (gamma * inv_l) + x_q).astype(o_ref.dtype)


def _pick_query_tile(hw, tq=None):
    """Largest lane-aligned query tile dividing HW (or a user override)."""
    if tq is not None:
        assert hw % tq == 0 and tq % 128 == 0, (hw, tq)
        return tq
    for t in (1024, 512, 256, 128):
        if hw % t == 0:
            return t
    # TODO(synk): pad HW to a multiple of 128 with masked keys instead of this
    #             un-tiled fallback (blows VMEM for realistic DANet maps).
    return hw


def _fuse_projection(wq, bq, wk, bk, wv, bv, C, Cq, cq_pad):
    """Build the fused (2*cq_pad + C + 1, C) weight and bias.

    Padded Q/K rows are zero (weight and bias) so they contribute nothing to
    the energy; the final row has zero weight and bias 1.0 so its projection
    output is identically 1 -> softmax denominator via the P@V matmul.
    """
    R = 2 * cq_pad + C + 1
    w = jnp.zeros((R, C), jnp.float32)
    b = jnp.zeros((R, 1), jnp.float32)
    w = w.at[0:Cq].set(wq.reshape(Cq, C).astype(jnp.float32))
    w = w.at[cq_pad:cq_pad + Cq].set(wk.reshape(Cq, C).astype(jnp.float32))
    w = w.at[2 * cq_pad:2 * cq_pad + C].set(wv.reshape(C, C).astype(jnp.float32))
    b = b.at[0:Cq, 0].set(bq.astype(jnp.float32))
    b = b.at[cq_pad:cq_pad + Cq, 0].set(bk.astype(jnp.float32))
    b = b.at[2 * cq_pad:2 * cq_pad + C, 0].set(bv.astype(jnp.float32))
    b = b.at[R - 1, 0].set(1.0)
    return w.astype(jnp.bfloat16), b            # bf16 MXU operand, f32 bias


def pam_forward(x_nchw, wq, bq, wk, bk, wv, bv, gamma, *, tq=None):
    """PAM_Module.forward.

    x_nchw: (B, C, H, W); wq/wk: (C//8, C, 1, 1); wv: (C, C, 1, 1);
    bq/bk: (C//8,); bv: (C,); gamma: scalar.
    """
    B, C, H, W = x_nchw.shape
    Cq = wq.shape[0]
    HW = H * W
    TQ = _pick_query_tile(HW, tq)
    n_q = HW // TQ

    # Align each Q/K section to a bf16 sublane tile so in-kernel row slices of
    # the bf16 scratch never cross tile boundaries.
    cq_pad = ((Cq + 15) // 16) * 16
    R = 2 * cq_pad + C + 1

    w_fused, b_fused = _fuse_projection(wq, bq, wk, bk, wv, bv, C, Cq, cq_pad)

    # Free contiguous reshape only — no transpose / pad HBM round trips.
    x_flat = x_nchw.reshape(B, C, HW)
    gamma_s = jnp.asarray(gamma, jnp.float32).reshape(1)

    const = lambda b, qi: (0, 0)

    out_flat = pl.pallas_call(
        functools.partial(pam_kernel, cq_pad=cq_pad),
        out_shape=jax.ShapeDtypeStruct((B, C, HW), x_nchw.dtype),
        grid=(B, n_q),
        in_specs=[
            pl.BlockSpec(memory_space=pltpu.MemorySpace.SMEM),        # gamma
            pl.BlockSpec((R, C), const),                              # fused W
            pl.BlockSpec((R, 1), const),                              # fused bias
            pl.BlockSpec((None, C, HW), lambda b, qi: (b, 0, 0)),     # x (full slab)
        ],
        out_specs=pl.BlockSpec((None, C, TQ), lambda b, qi: (b, 0, qi)),
        scratch_shapes=[pltpu.VMEM((R, HW), jnp.bfloat16)],           # hoisted QKV+1
        compiler_params=pltpu.CompilerParams(
            dimension_semantics=("parallel", "arbitrary"),
            vmem_limit_bytes=48 * 1024 * 1024),
    )(gamma_s, w_fused, b_fused, x_flat)

    return out_flat.reshape(B, C, H, W)


def _reference(x, wq, bq, wk, bk, wv, bv, gamma):
    """Pure-JAX f32 reference matching the PyTorch module."""
    B, C, H, W = x.shape
    Cq = wq.shape[0]
    HW = H * W
    xf = x.reshape(B, C, HW).astype(jnp.float32)
    wq2 = wq.reshape(Cq, C).astype(jnp.float32)
    wk2 = wk.reshape(Cq, C).astype(jnp.float32)
    wv2 = wv.reshape(C, C).astype(jnp.float32)

    q = jnp.einsum("oc,bcp->bop", wq2, xf) + bq.astype(jnp.float32)[None, :, None]
    k = jnp.einsum("oc,bcp->bop", wk2, xf) + bk.astype(jnp.float32)[None, :, None]
    v = jnp.einsum("oc,bcp->bop", wv2, xf) + bv.astype(jnp.float32)[None, :, None]

    energy = jnp.einsum("bci,bcj->bij", q, k)          # (B, HW, HW)
    attn = jax.nn.softmax(energy, axis=-1)
    out = jnp.einsum("bcj,bij->bci", v, attn)          # (B, C, HW)
    out = gamma * out + xf
    return out.reshape(B, C, H, W).astype(x.dtype)


if __name__ == "__main__":
    # in_dim must be >= 8 so that query/key channels = in_dim // 8 >= 1.
    B, C, H, W = 2, 32, 16, 16
    Cq = C // 8

    key = jax.random.PRNGKey(0)
    kx, k1, k2, k3, k4, k5, k6 = jax.random.split(key, 7)
    x = jax.random.normal(kx, (B, C, H, W), jnp.float32)
    wq = 0.2 * jax.random.normal(k1, (Cq, C, 1, 1), jnp.float32)
    bq = 0.1 * jax.random.normal(k2, (Cq,), jnp.float32)
    wk = 0.2 * jax.random.normal(k3, (Cq, C, 1, 1), jnp.float32)
    bk = 0.1 * jax.random.normal(k4, (Cq,), jnp.float32)
    wv = 0.2 * jax.random.normal(k5, (C, C, 1, 1), jnp.float32)
    bv = 0.1 * jax.random.normal(k6, (C,), jnp.float32)
    # The module initializes gamma = 0 (output == input); use a nonzero value
    # so the attention path is actually exercised by the check.
    gamma = jnp.float32(0.7)

    # tq=128 forces n_q=2 so the hoisted-scratch / multi-tile path is exercised.
    out = pam_forward(x, wq, bq, wk, bk, wv, bv, gamma, tq=128)
    out = jax.block_until_ready(out)

    ref = _reference(x, wq, bq, wk, bk, wv, bv, gamma)
    assert out.shape == (B, C, H, W), out.shape
    max_err = float(jnp.max(jnp.abs(out - ref)))
    # bf16 MXU operands + approx reciprocal => ~1e-2-level error is expected.
    assert jnp.allclose(out, ref, atol=5e-2, rtol=5e-2), f"max_err={max_err}"
    print("KERNEL_OK")
</pallas_src>

<mosaic_0001>
module attributes {stable_mosaic.version = 11 : i64} {
  func.func @pam_kernel(%arg0: i32, %arg1: i32, %arg2: memref<1xf32, #tpu.memory_space<smem>>, %arg3: memref<65x32xbf16, #tpu.memory_space<vmem>>, %arg4: memref<65x1xf32, #tpu.memory_space<vmem>>, %arg5: memref<1x32x256xf32, #tpu.memory_space<vmem>>, %arg6: memref<1x32x128xf32, #tpu.memory_space<vmem>>, %arg7: memref<65x256xbf16, #tpu.memory_space<vmem>>) attributes {dimension_semantics = [#tpu.dimension_semantics<parallel>, #tpu.dimension_semantics<arbitrary>], iteration_bounds = array<i64: 2, 2>, scalar_prefetch = 0 : i64, scratch_operands = 1 : i64, tpu.core_type = #tpu.core_type<tc>, window_params = [{transform_indices = @transform_0, window_bounds = array<i64: 1>}, {pipeline_mode = #tpu.pipeline_mode<synchronous>, transform_indices = @transform_1, window_bounds = array<i64: 65, 32>}, {pipeline_mode = #tpu.pipeline_mode<synchronous>, transform_indices = @transform_2, window_bounds = array<i64: 65, 1>}, {transform_indices = @transform_3, window_bounds = array<i64: 1, 32, 256>}, {transform_indices = @transform_4, window_bounds = array<i64: 1, 32, 128>}]} {
    %c0_i32 = arith.constant 0 : i32
    %0 = arith.cmpi eq, %arg1, %c0_i32 : i32
    %1 = arith.extui %0 : i1 to i32
    %c0_i32_0 = arith.constant 0 : i32
    %2 = arith.cmpi ne, %1, %c0_i32_0 : i32
    scf.if %2 {
      %c0_11 = arith.constant 0 : index
      %c0_12 = arith.constant 0 : index
      %c0_13 = arith.constant 0 : index
      %32 = vector.load %arg5[%c0_11, %c0_12, %c0_13] : memref<1x32x256xf32, #tpu.memory_space<vmem>>, vector<1x32x256xf32>
      %33 = vector.shape_cast %32 : vector<1x32x256xf32> to vector<32x256xf32>
      %34 = arith.truncf %33 : vector<32x256xf32> to vector<32x256xbf16>
      %c0_14 = arith.constant 0 : index
      %c0_15 = arith.constant 0 : index
      %35 = vector.load %arg3[%c0_14, %c0_15] : memref<65x32xbf16, #tpu.memory_space<vmem>>, vector<65x32xbf16>
      %cst_16 = arith.constant dense<0.000000e+00> : vector<65x256xf32>
      %36 = tpu.matmul %35, %34, %cst_16 {dimension_numbers = #tpu.dot_dimension_numbers<[1], [0], [0], [1], [0, 0, 1, 1], [], []>} : vector<65x32xbf16>, vector<32x256xbf16>, vector<65x256xf32> -> vector<65x256xf32>
      %c0_17 = arith.constant 0 : index
      %c0_18 = arith.constant 0 : index
      %37 = vector.load %arg4[%c0_17, %c0_18] : memref<65x1xf32, #tpu.memory_space<vmem>>, vector<65x1xf32>
      %38 = vector.broadcast %37 : vector<65x1xf32> to vector<65x256xf32>
      %39 = arith.addf %36, %38 : vector<65x256xf32>
      %40 = arith.truncf %39 : vector<65x256xf32> to vector<65x256xbf16>
      %c0_19 = arith.constant 0 : index
      %c0_20 = arith.constant 0 : index
      %41 = vector.load %arg7[%c0_19, %c0_20] : memref<65x256xbf16, #tpu.memory_space<vmem>>, vector<65x256xbf16>
      tpu.vector_store %arg7[%c0_19, %c0_20], %40 {strides = array<i32>} : memref<65x256xbf16, #tpu.memory_space<vmem>>, vector<65x256xbf16>,
    } else {
    }
    %c128_i32 = arith.constant 128 : i32
    %3 = arith.muli %arg1, %c128_i32 : i32
    %4 = tpu.assume_multiple %3, 128 : i32
    %c0 = arith.constant 0 : index
    %5 = arith.index_cast %4 : i32 to index
    %6 = vector.load %arg7[%c0, %5] : memref<65x256xbf16, #tpu.memory_space<vmem>>, vector<16x128xbf16>
    %c16 = arith.constant 16 : index
    %c0_1 = arith.constant 0 : index
    %7 = vector.load %arg7[%c16, %c0_1] : memref<65x256xbf16, #tpu.memory_space<vmem>>, vector<16x256xbf16>
    %c32 = arith.constant 32 : index
    %c0_2 = arith.constant 0 : index
    %8 = vector.load %arg7[%c32, %c0_2] : memref<65x256xbf16, #tpu.memory_space<vmem>>, vector<33x256xbf16>
    %cst = arith.constant dense<0.000000e+00> : vector<128x256xf32>
    %9 = tpu.matmul %6, %7, %cst {dimension_numbers = #tpu.dot_dimension_numbers<[0], [0], [1], [1], [0, 1, 1, 1], [], []>} : vector<16x128xbf16>, vector<16x256xbf16>, vector<128x256xf32> -> vector<128x256xf32>
    %cst_3 = arith.constant dense<0xFF800000> : vector<128xf32>
    %10 = vector.multi_reduction <maximumf>, %9, %cst_3 [1] : vector<128x256xf32> to vector<128xf32>
    %11 = vector.shape_cast %10 : vector<128xf32> to vector<128x1xf32>
    %12 = vector.broadcast %11 : vector<128x1xf32> to vector<128x256xf32>
    %13 = arith.subf %9, %12 : vector<128x256xf32>
    %14 = math.exp %13 : vector<128x256xf32>
    %15 = arith.truncf %14 : vector<128x256xf32> to vector<128x256xbf16>
    %cst_4 = arith.constant dense<0.000000e+00> : vector<33x128xf32>
    %16 = tpu.matmul %8, %15, %cst_4 {dimension_numbers = #tpu.dot_dimension_numbers<[1], [1], [0], [0], [0, 0, 1, 0], [], []>} : vector<33x256xbf16>, vector<128x256xbf16>, vector<33x128xf32> -> vector<33x128xf32>
    %17 = vector.extract_strided_slice %16 {offsets = [0, 0], sizes = [32, 128], strides = [1, 1]} : vector<33x128xf32> to vector<32x128xf32>
    %18 = vector.extract_strided_slice %16 {offsets = [32, 0], sizes = [1, 128], strides = [1, 1]} : vector<33x128xf32> to vector<1x128xf32>
    %19 = tpu.reciprocal %18 {approx = true} : vector<1x128xf32> -> vector<1x128xf32>
    %c0_5 = arith.constant 0 : index
    %20 = memref.load %arg2[%c0_5] : memref<1xf32, #tpu.memory_space<smem>>
    %c0_6 = arith.constant 0 : index
    %c0_7 = arith.constant 0 : index
    %21 = arith.index_cast %4 : i32 to index
    %22 = vector.load %arg5[%c0_6, %c0_7, %21] : memref<1x32x256xf32, #tpu.memory_space<vmem>>, vector<1x32x128xf32>
    %23 = vector.shape_cast %22 : vector<1x32x128xf32> to vector<32x128xf32>
    %24 = vector.broadcast %20 : f32 to vector<1x128xf32>
    %25 = arith.mulf %24, %19 : vector<1x128xf32>
    %26 = vector.broadcast %25 : vector<1x128xf32> to vector<32x128xf32>
    %27 = arith.mulf %17, %26 : vector<32x128xf32>
    %28 = arith.addf %27, %23 : vector<32x128xf32>
    %c0_8 = arith.constant 0 : index
    %c0_9 = arith.constant 0 : index
    %c0_10 = arith.constant 0 : index
    %29 = vector.load %arg6[%c0_8, %c0_9, %c0_10] : memref<1x32x128xf32, #tpu.memory_space<vmem>>, vector<1x32x128xf32>
    %30 = vector.shape_cast %29 : vector<1x32x128xf32> to vector<32x128xf32>
    %31 = vector.shape_cast %28 : vector<32x128xf32> to vector<1x32x128xf32>
    tpu.vector_store %arg6[%c0_8, %c0_9, %c0_10], %31 {strides = array<i32>} : memref<1x32x128xf32, #tpu.memory_space<vmem>>, vector<1x32x128xf32>,
    return
  }
  func.func @transform_0(%arg0: i32, %arg1: i32) -> i32 {
    %c0_i32 = arith.constant 0 : i32
    %c0_i32_0 = arith.constant 0 : i32
    return %c0_i32 : i32
  }
  func.func @transform_1(%arg0: i32, %arg1: i32) -> (i32, i32) {
    %c0_i32 = arith.constant 0 : i32
    %c0_i32_0 = arith.constant 0 : i32
    %c0_i32_1 = arith.constant 0 : i32
    return %c0_i32, %c0_i32_0 : i32, i32
  }
  func.func @transform_2(%arg0: i32, %arg1: i32) -> (i32, i32) {
    %c0_i32 = arith.constant 0 : i32
    %c0_i32_0 = arith.constant 0 : i32
    %c0_i32_1 = arith.constant 0 : i32
    return %c0_i32, %c0_i32_0 : i32, i32
  }
  func.func @transform_3(%arg0: i32, %arg1: i32) -> (i32, i32, i32) {
    %c0_i32 = arith.constant 0 : i32
    %c0_i32_0 = arith.constant 0 : i32
    %c0_i32_1 = arith.constant 0 : i32
    return %arg0, %c0_i32, %c0_i32_0 : i32, i32, i32
  }
  func.func @transform_4(%arg0: i32, %arg1: i32) -> (i32, i32, i32) {
    %c0_i32 = arith.constant 0 : i32
    %c0_i32_0 = arith.constant 0 : i32
    return %arg0, %c0_i32, %arg1 : i32, i32, i32
  }
}

</mosaic_0001>

<bundles_post_ra>
// kernel: tpu_custom_call.1
= control target key start
LH: loop header
LB: loop body
LE: loop exit
PB: predicated region body
PF: predicated region fallthrough
CT: control target
= control target key end

     0   :  { %s1771_s0 = inlined_call_operand.<no memory space> [shape: f32[1], index: 0, kind: input, shape index: {}]   ;;  %s1772_s1 = inlined_call_operand.vmem [shape: bf16[65,32], index: 1, kind: input, shape index: {}]   ;;  %s1773_s2 = inlined_call_operand.vmem [shape: f32[65,1], index: 2, kind: input, shape index: {}]   ;;  %s1774_s3 = inlined_call_operand.vmem [shape: f32[2,32,256], index: 3, kind: input, shape index: {}]   ;;  %s1775_s4 = inlined_call_operand.hbm [shape: f32[2,32,256], index: 4, kind: output, shape index: {}]  }
   0x1   :  { %9 = sst [smem:[#allocation3]] %s1771_s0 }
   0x2   :  { %10 = vsyncpa [#allocation5], 0 }
   0x3   :  { %12 = vsyncpa [#allocation5 + $0x1], 0  ;;  %s1406_s17 = smov 0   ;;  %s1408_s18 = smov 0  }
   0x4   :  { %s1410_s19 = smov 0   ;;  %s1412_s20 = smov 0  }
   0x5   :  { %s1414_s21 = smov 0   ;;  %s1416_s22 = smov 0  }
   0x6   :  { %s1418_s23 = smov 0   ;;  %s1420_s24 = smov 0  }
   0x7 LB: > { %s1032_s0 = sadd.s32 4294967295, %s1370_s24   ;;  %s1033_s25 = sadd.s32 4294967294, %s1370_s24   ;;  %s1370_s24 = sphi %s1420_s24, %s18_s24   ;;  %s1366_s23 = sphi %s1418_s23, %s1788_s23   ;;  %s1362_s22 = sphi %s1416_s22, %s1787_s22   ;;  %s1358_s21 = sphi %s1414_s21, %s1786_s21   ;;  %s1354_s20 = sphi %s1412_s20, %s1785_s20   ;;  %s1350_s19 = sphi %s1410_s19, %s1784_s19   ;;  %s1346_s18 = sphi %s1408_s18, %s1783_s18   ;;  %s1342_s17 = sphi %s1406_s17, %s1782_s17  }
   0x8   : > { %s27_s26 = sadd.s32 1, %s1362_s22  ;;  %s30_s27 = sadd.s32 1, %s1366_s23 }
   0x9   : > { %p28_p0 = scmp.ge.s32.totalorder %s27_s26, 2  ;;  %p138_p1 = scmp.ne.s32.totalorder %s1350_s19, %s1346_s18 }
   0xa   : > { %p139_p2 = scmp.eq.s32.totalorder %s1032_s0, 3  ;;  %p144_p5 = scmp.ne.s32.totalorder %s1346_s18, %s1342_s17 }
   0xb   : > { %s1790_s26 = smov (%p28_p0, %s27_s26), 0  ;;  %s1792_s27 = smov (!%p28_p0, %s30_s27), %s1366_s23 }
   0xc   : > { %s124_s28 = ssub.s32 %s1362_s22, %s1790_s26  ;;  %p1457_p3 = por %p139_p2, %p138_p1 }
   0xd   : > { %p32_p4 = scmp.ge.s32.totalorder %s1792_s27, 2  ;;  %p145_p6 = scmp.eq.s32.totalorder %s1033_s25, 3 }
   0xe   : > { %p1036_p7 = scmp.ge.s32.totalorder %s1370_s24, 1  ;;  %p180_p9 = scmp.lt.s32.totalorder %s1370_s24, 5 }
   0xf   : > { %s1794_s27 = smov (%p32_p4, %s1792_s27), 0  ;;  %p1466_p8 = por %p145_p6, %p144_p5 }
  0x10   : > { %s123_s5 = ssub.s32 %s1366_s23, %s1794_s27  ;;  %s128_s6 = sadd.s32 1, %s1350_s19 }
  0x11   : > { %s125_s7 = sor.u32 %s124_s28, %s123_s5  ;;  %p181_p10 = pnand %p1036_p7, %p180_p9 }
  0x12   : > { %p126_p11 = scmp.eq.s32.totalorder %s125_s7, 0  ;;  %s203_s9 = sand.u32 (!%p181_p10), 1, %s1346_s18  }
  0x13   : > { %184 = sbr.rel (%p181_p10) target bundleno = 1086 (0x43e), region = 36  ;;  %p206_p12 = scmp.lt.s32.totalorder (!%p181_p10), %s1358_s21, 1 }
  0x14   : > { %s1475_s8 = scalar_select %p126_p11, %s1350_s19, %s128_s6  }
  0x15   : > { %s1037_s10 = sshll.u32 (!%p181_p10), %s203_s9, 5  ;;  %p1040_p13 = scmp.ne.s32.totalorder (!%p181_p10), %s1354_s20, 0 }
  0x16   : > { %s1487_s16 = scalar_lea.vmem (!%p181_p10), [#allocation4], %s1037_s10 }
  0x1a   : > { %s207_s11 = scalar_select %p206_p12, %s1358_s21, 1 }
  0x1b   : > { %215 = sbr.rel (%p1040_p13) target bundleno = 277 (0x115), region = 40  ;;  %v1372_v7 = vmov (!%p1040_p13), 0   ;;  %v1193_v13 = vld [vmem:[%s1772_s1] sm:$0xff] (!%p1040_p13)   ;;  %v1194_v14 = vld [vmem:[%s1772_s1 + $0x18] sm:$0xff] (!%p1040_p13)   ;;  %vm314_vm0 = vcmask (!%p1040_p13), 261120   ;;  %v238_v16 = vld [vmem:[%s1773_s2 + $0x8] sm:$0xff] (!%p1040_p13) }
  0x1c   : > { %s1085_s12 = sshll.u32 %s207_s11, 6  ;;  %362 = vmatprep.mubr.bf16.mxu0 (!%p1040_p13), %v1372_v7  ;;  %392 = vmatprep.mubr.bf16.mxu1 (!%p1040_p13), %v1372_v7  ;;  %v245_v15 = vld [vmem:[%s1773_s2 + $0x40] sm:$0x1] (!%p1040_p13)  ;;  %v239_v18 = vld [vmem:[%s1773_s2 + $0x10] sm:$0xff] (!%p1040_p13)  ;;  %v240_v19 = vld [vmem:[%s1773_s2 + $0x18] sm:$0xff] (!%p1040_p13)  ;;  %vm475_vm1 = vcmask (!%p1040_p13), 1040384  }
  0x1d   : > { %s1485_s15 = scalar_lea.vmem %s1774_s3, %s1085_s12  ;;  %1191 = vset.pattern.permute.xlu0 (!%p1040_p13), %v1372_v7  ;;  %1192 = vset.pattern.permute.xlu1 (!%p1040_p13), %v1372_v7  ;;  %v237_v17 = vld [vmem:[%s1773_s2] sm:$0xff] (!%p1040_p13)  ;;  %v1195_v21 = vld [vmem:[%s1772_s1 + $0x8] sm:$0xff] (!%p1040_p13)   ;;  %v243_v24 = vld [vmem:[%s1773_s2 + $0x30] sm:$0xff] (!%p1040_p13)  ;;  %vm476_vm2 = vsmask.f32 (!%p1040_p13), 256  ;;  %vm478_vm3 = vcmask (!%p1040_p13), 1044484  }
  0x1e   : > { %v217_v0 = vld [vmem:[%s1485_s15 + $0x8] sm:$0xff] (!%p1040_p13)  ;;  %v219_v1 = vld [vmem:[%s1485_s15 + $0x18] sm:$0xff] (!%p1040_p13)  ;;  %v216_v2 = vld [vmem:[%s1485_s15] sm:$0xff] (!%p1040_p13)  ;;  %288 = vperm.xlu0 (!%p1040_p13), %1191, %v245_v15   ;;  %253 = vperm.xlu1 (!%p1040_p13), %1192, %v238_v16   ;;  %vm479_vm4 = vsmask.f32 (!%p1040_p13), 4352 }
  0x1f   : > { %v225_v3 = vpack.c.bf16 (!%p1040_p13), %v219_v1, %v217_v0  ;;  %v218_v4 = vld [vmem:[%s1485_s15 + $0x10] sm:$0xff] (!%p1040_p13)  ;;  %v221_v5 = vld [vmem:[%s1485_s15 + $0x28] sm:$0xff] (!%p1040_p13)  ;;  %v223_v6 = vld [vmem:[%s1485_s15 + $0x38] sm:$0xff] (!%p1040_p13) }
  0x20   : > { %v224_v8 = vpack.c.bf16 (!%p1040_p13), %v218_v4, %v216_v2  ;;  %v227_v9 = vpack.c.bf16 (!%p1040_p13), %v223_v6, %v221_v5  ;;  %v220_v10 = vld [vmem:[%s1485_s15 + $0x20] sm:$0xff] (!%p1040_p13)  ;;  %v222_v11 = vld [vmem:[%s1485_s15 + $0x30] sm:$0xff] (!%p1040_p13)  ;;  %v242_v23 = vld [vmem:[%s1773_s2 + $0x28] sm:$0xff] (!%p1040_p13) }
  0x21   : > { %330 = vmatprep.subr.bf16.mxu0 (!%p1040_p13), %v225_v3  ;;  %1095 = vmatprep.subr.bf16.mxu1 (!%p1040_p13), %v225_v3  ;;  %v226_v12 = vpack.c.bf16 (!%p1040_p13), %v222_v11, %v220_v10  ;;  %v241_v20 = vld [vmem:[%s1773_s2 + $0x20] sm:$0xff] (!%p1040_p13)  ;;  %v244_v25 = vld [vmem:[%s1773_s2 + $0x38] sm:$0xff] (!%p1040_p13)  ;;  %v1197_v26 = vld [vmem:[%s1772_s1 + $0x10] sm:$0xff] (!%p1040_p13)  }
  0x22   : > { %331 = vmatpush1.bf16.msra.mxu0 %v224_v8  ;;  %1097 = vmatpush1.bf16.msra.mxu1 %v224_v8  ;;  %v1196_v22 = vld [vmem:[%s1772_s1 + $0x20] ss:$0 sps:$4 sm:$0x11]   ;;  %vm1547_vm5 = vmand %vm475_vm1, %vm476_vm2 }
  0x23   : > { %332 = vmatprep.subr.bf16.mxu0 %v227_v9  ;;  %1096 = vmatprep.subr.bf16.mxu1 %v227_v9  ;;  %vm1551_vm6 = vmand %vm478_vm3, %vm479_vm4  ;;  %v482_v4 = vld [vmem:[#allocation2 + $0x40] sm:$0x11] }
  0x24   : > { %248 = vperm.xlu0 %1191, %v237_v17   ;;  %258 = vperm.xlu1 %1192, %v239_v18   ;;  %vm481_vm7 = vmor %vm1551_vm6, %vm1547_vm5 }
  0x26   : > { %333 = vmatpush1.bf16.msra.mxu0 %v226_v12  ;;  %1098 = vmatpush1.bf16.msra.mxu1 %v226_v12 }
  0x28   : > { %263 = vperm.xlu0 %1191, %v240_v19   ;;  %268 = vperm.xlu1 %1192, %v241_v20  }
  0x29   : > { %1046 = vmatmul.mubr.msk.bf16.vlgmr.msra.gmra.mrb[0].mxu0 %vm314_vm0, %v1193_v13  ;;  %1049 = vmatmul.mubr.msk.bf16.vlgmr.msra.gmra.mrb[0].mxu1 %vm314_vm0, %v1194_v14 }
  0x2a   : > { %372 = vmatprep.mubr.bf16.mxu0 %v1372_v7  ;;  %402 = vmatprep.mubr.bf16.mxu1 %v1372_v7 }
  0x2c   : > { %273 = vperm.xlu0 %1191, %v242_v23   ;;  %278 = vperm.xlu1 %1192, %v243_v24  }
  0x30   : > { %283 = vperm.xlu0 %1191, %v244_v25  }
  0x31   : > { %1047 = vmatmul.mubr.msk.bf16.gmra.mrb[4].mxu0 %vm314_vm0, %v1195_v21  ;;  %1050 = vmatmul.mubr.msk.bf16.gmra.mrb[4].mxu1 %vm314_vm0, %v1196_v22 }
  0x32   : > { %382 = vmatprep.mubr.bf16.mxu0 %v1372_v7 }
  0x39   : > { %1048 = vmatmul.mubr.msk.bf16.gmra.mrb[8].mxu0 %vm314_vm0, %v1197_v26 }
  0x9d   : > { %v289_v27 = vpop.permute.xlu0 %288  ;;  %v254_v28 = vpop.permute.xlu1 %253 }
  0xa3   : > { %v249_v29 = vpop.permute.xlu0 %248  ;;  %v259_v30 = vpop.permute.xlu1 %258 }
  0xa7   : > { %v264_v31 = vpop.permute.xlu0 %263  ;;  %v269_v32 = vpop.permute.xlu1 %268 }
  0xab   : > { %v1545_v33 = vpop.permute.xlu0 %273  ;;  %v279_v34 = vpop.permute.xlu1 %278 }
  0xaf   : > { %v284_v35 = vpop.permute.xlu0 %283 }
  0xfc   : > { %v364_v36 = vpop.f32.mrb[0].mxu0  ;;  %v394_v37 = vpop.f32.mrb[0].mxu1 }
  0xfd   : > { %v365_v38 = vadd.f32 %v364_v36, %v249_v29  ;;  %v366_v39 = vpop.f32.mrb[1].mxu0  ;;  %v396_v40 = vpop.f32.mrb[1].mxu1  ;;  %v395_v41 = vadd.f32 %v394_v37, %v279_v34 }
  0xfe   : > { %v367_v42 = vadd.f32 %v366_v39, %v249_v29  ;;  %v368_v43 = vpop.f32.mrb[2].mxu0  ;;  %v398_v44 = vpop.f32.mrb[2].mxu1  ;;  %v397_v45 = vadd.f32 %v396_v40, %v279_v34 }
  0xff   : > { %v369_v46 = vadd.f32 %v368_v43, %v254_v28  ;;  %v399_v47 = vadd.f32 %v398_v44, %v284_v35  ;;  %v370_v48 = vpop.f32.mrb[3].mxu0  ;;  %v400_v49 = vpop.f32.mrb[3].mxu1 }
 0x100   : > { %v1086_v50 = vpack.c.bf16 %v367_v42, %v365_v38  ;;  %v371_v51 = vadd.f32 %v370_v48, %v254_v28  ;;  %v401_v52 = vadd.f32 %v400_v49, %v284_v35  ;;  %v1092_v53 = vpack.c.bf16 %v397_v45, %v395_v41 }
 0x102   : > { %467 = vst [vmem:[#allocation2] sm:$0xff] %v1086_v50  ;;  %v1087_v54 = vpack.c.bf16 %v371_v51, %v369_v46  ;;  %v1093_v55 = vpack.c.bf16 %v401_v52, %v399_v47  ;;  %473 = vst [vmem:[#allocation2 + $0x30] sm:$0xff] %v1092_v53 }
 0x104   : > { %468 = vst [vmem:[#allocation2 + $0x8] sm:$0xff] %v1087_v54  ;;  %474 = vst [vmem:[#allocation2 + $0x38] sm:$0xff] %v1093_v55  ;;  %v374_v57 = vpop.f32.mrb[4].mxu0  ;;  %v404_v58 = vpop.f32.mrb[4].mxu1 }
 0x105   : > { %v375_v60 = vadd.f32 %v374_v57, %v259_v30  ;;  %v405_v61 = vadd.f32 %v404_v58, %v289_v27  ;;  %v376_v62 = vpop.f32.mrb[5].mxu0  ;;  %v406_v63 = vpop.f32.mrb[5].mxu1 }
 0x106   : > { %v377_v0 = vadd.f32 %v376_v62, %v259_v30  ;;  %v407_v1 = vadd.f32 %v406_v63, %v289_v27  ;;  %v378_v2 = vpop.f32.mrb[6].mxu0  ;;  %v408_v3 = vpop.f32.mrb[6].mxu1 }
 0x107   : > { %v379_v5 = vadd.f32 %v378_v2, %v264_v31  ;;  %v380_v6 = vpop.f32.mrb[7].mxu0  ;;  %v409_v7 = vpop.f32.mrb[7].mxu1 }
 0x108   : > { %v1088_v8 = vpack.c.bf16 %v377_v0, %v375_v60  ;;  %v1094_v9 = vpack.c.bf16 %v407_v1, %v405_v61  ;;  %v381_v10 = vadd.f32 %v380_v6, %v264_v31 }
 0x10a   : > { %469 = vst [vmem:[#allocation2 + $0x10] sm:$0xff] %v1088_v8  ;;  %v483_v11 = vsel %vm481_vm7, %v1094_v9, %v482_v4  ;;  %v1089_v12 = vpack.c.bf16 %v381_v10, %v379_v5 }
 0x10b   : > { %484 = vst [vmem:[#allocation2 + $0x40] sm:$0x11] %v483_v11 }
 0x10c   : > { %470 = vst [vmem:[#allocation2 + $0x18] sm:$0xff] %v1089_v12  ;;  %v384_v13 = vpop.f32.mrb[8].mxu0 }
 0x10d   : > { %v385_v14 = vadd.f32 %v384_v13, %v269_v32  ;;  %v386_v15 = vpop.f32.mrb[9].mxu0 }
 0x10e   : > { %v387_v16 = vadd.f32 %v386_v15, %v269_v32  ;;  %v388_v17 = vpop.f32.mrb[10].mxu0 }
 0x10f   : > { %v389_v18 = vadd.f32 %v388_v17, %v1545_v33  ;;  %v390_v19 = vpop.f32.mrb[11].mxu0 }
 0x110   : > { %v1090_v20 = vpack.c.bf16 %v387_v16, %v385_v14  ;;  %v391_v21 = vadd.f32 %v390_v19, %v1545_v33 }
 0x112   : > { %471 = vst [vmem:[#allocation2 + $0x20] sm:$0xff] %v1090_v20  ;;  %v1091_v22 = vpack.c.bf16 %v391_v21, %v389_v18 }
 0x114   : > { %472 = vst [vmem:[#allocation2 + $0x28] sm:$0xff] %v1091_v22 }
 0x115 PF: > { %s1060_s10 = sshll.u32 %s1354_s20, 7  ;;  %v1199_v23 = vld [vmem:[#allocation2 + $0x14] ss:$8 sps:$4 sm:$0xff]   ;;  %v1201_v24 = vld [vmem:[#allocation2 + $0x10] ss:$8 sps:$4 sm:$0xff]   ;;  %v1373_v25 = vmov 0  }
 0x116   : > { %s1562_s11 = sshra.s32 %s1060_s10, 7  ;;  %588 = vmatprep.mubr.bf16.mxu0 %v1373_v25  ;;  %556 = vmatprep.subr.bf16.mxu0 %v1199_v23  ;;  %vm531_vm8 = vcmask 130048   ;;  %v1204_v19 = vld [vmem:[#allocation2 + $0x34] ss:$8 sps:$4 sm:$0xff]   ;;  %s913_s14 = sld [smem:[#allocation3]] }
 0x117   : > { %s1061_s12 = sshll.u32 %s1562_s11, 2  ;;  %557 = vmatpush1.bf16.msra.mxu0 %v1201_v24  ;;  %896 = vmatprep.mubr.bf16.mxu1 %v1204_v19  ;;  %s1081_s0 = sshll.u32 %s1358_s21, 3 }
 0x118   : > { %s489_s13 = scalar_lea.vmem [#allocation2], %s1061_s12  ;;  %s1079_s25 = sshll.u32 %s1562_s11, 3 }
 0x119   : > { %s950_s28 = sadd.s32 %s1354_s20, %s1081_s0  ;;  %s915_s5 = scalar_lea.vmem %s1485_s15, %s1079_s25 }
 0x11a   : > { %s1082_s6 = sshll.u32 %s950_s28, 7  ;;  %s953_s7 = sshll.u32 %s1487_s16, 4  ;;  %s1711_s7 = int_to_ptr.vmem [resolvable:$true] %s953_s7 }
 0x11b   : > { %v1198_v26 = vld [vmem:[%s489_s13] ss:$8 sps:$4 sm:$0xff]   ;;  %v1209_v20 = vld [vmem:[#allocation2 + $0x24] ss:$8 sps:$4 sm:$0xff]   ;;  %s1709_s15 = scalar_lea.hbm %s1775_s4, %s1082_s6  ;;  %s1719_s10 = scalar_lea.sflag [#allocation5], %s203_s9 }
 0x11c   : > { %505 = vxpose.xlu0.c.b16.start.end [1/1] (short) %v1198_v26, 128  ;;  %s1276_s11 = scalar_lea.vmem %s1711_s7, 512  ;;  %s1374_s12 = smov [#allocation4]  }
 0x11d   : > { %p1277_p0 = scmp.ne.s32.totalorder %s1711_s7, %s1276_s11  ;;  %s1280_s13 = sshll.u32 %s1374_s12, 4  ;;  %s1281_s13 = int_to_ptr.vmem [resolvable:$false] %s1280_s13 }
 0x11e   : > { %p1283_p4 = scmp.lt.s32.totalorder %s1711_s7, %s1281_s13 }
 0x11f   : > { %p1278_p1 = pnand %p1277_p0, %p1457_p3 }
 0x121   : > { %p1279_p2 = pneg %p1278_p1 }
 0x182   : > { %v513_v27 = vpop.trf.xlu0 }
 0x183   : > { %1065 = vmatmul.mubr.msk.bf16.vlgmr.msra.gmra.mrb[0].mxu0 %vm531_vm8, %v513_v27 }
 0x184   : > { %598 = vmatprep.mubr.bf16.mxu0 %v1373_v25 }
 0x186   : > { %v514_v28 = vpop.trf.xlu0 }
 0x18a   : > { %v515_v29 = vpop.trf.xlu0 }
 0x18b   : > { %1066 = vmatmul.mubr.msk.bf16.gmra.mrb[4].mxu0 %vm531_vm8, %v514_v28 }
 0x18c   : > { %608 = vmatprep.mubr.bf16.mxu0 %v1373_v25 }
 0x18e   : > { %v516_v30 = vpop.trf.xlu0 }
 0x192   : > { %v517_v31 = vpop.trf.xlu0 }
 0x193   : > { %1067 = vmatmul.mubr.msk.bf16.gmra.mrb[8].mxu0 %vm531_vm8, %v515_v29 }
 0x194   : > { %618 = vmatprep.mubr.bf16.mxu0 %v1373_v25 }
 0x196   : > { %v518_v32 = vpop.trf.xlu0 }
 0x19a   : > { %v519_v33 = vpop.trf.xlu0 }
 0x19b   : > { %1068 = vmatmul.mubr.msk.bf16.gmra.mrb[12].mxu0 %vm531_vm8, %v516_v30 }
 0x19c   : > { %628 = vmatprep.mubr.bf16.mxu0 %v1373_v25 }
 0x19e   : > { %v520_v34 = vpop.trf.xlu0 }
 0x1a3   : > { %1069 = vmatmul.mubr.msk.bf16.gmra.mrb[16].mxu0 %vm531_vm8, %v517_v31 }
 0x1a4   : > { %638 = vmatprep.mubr.bf16.mxu0 %v1373_v25 }
 0x1ab   : > { %1070 = vmatmul.mubr.msk.bf16.gmra.mrb[20].mxu0 %vm531_vm8, %v518_v32 }
 0x1ac   : > { %648 = vmatprep.mubr.bf16.mxu0 %v1373_v25 }
 0x1b3   : > { %1071 = vmatmul.mubr.msk.bf16.gmra.mrb[24].mxu0 %vm531_vm8, %v519_v33 }
 0x1b4   : > { %658 = vmatprep.mubr.bf16.mxu0 %v1373_v25 }
 0x1bb   : > { %1072 = vmatmul.mubr.msk.bf16.gmra.mrb[28].mxu0 %vm531_vm8, %v520_v34 }
 0x1bc   : > { %888 = vmatprep.mubr.bf16.mxu0 %v1209_v20 }
 0x256   : > { %v1573_v35 = vpop.f32.mrb[0].mxu0 }
 0x257   : > { %v1575_v36 = vpop.f32.mrb[1].mxu0 }
 0x258   : > { %v1577_v37 = vpop.f32.mrb[2].mxu0  ;;  %v669_v38 = vmax.f32 %v1573_v35, %v1575_v36 }
 0x259   : > { %v1581_v39 = vpop.f32.mrb[3].mxu0 }
 0x25a   : > { %670 = vmax.xlane.f32.xlu0 %v669_v38  ;;  %v672_v40 = vmax.f32 %v1577_v37, %v1581_v39 }
 0x25c   : > { %673 = vmax.xlane.f32.xlu1 %v672_v40 }
 0x25e   : > { %v1585_v41 = vpop.f32.mrb[4].mxu0 }
 0x25f   : > { %v1587_v42 = vpop.f32.mrb[5].mxu0 }
 0x260   : > { %v1589_v43 = vpop.f32.mrb[6].mxu0  ;;  %v675_v44 = vmax.f32 %v1585_v41, %v1587_v42 }
 0x261   : > { %v1593_v45 = vpop.f32.mrb[7].mxu0 }
 0x262   : > { %676 = vmax.xlane.f32.xlu1 %v675_v44  ;;  %v678_v46 = vmax.f32 %v1589_v43, %v1593_v45 }
 0x266   : > { %679 = vmax.xlane.f32.xlu1 %v678_v46  ;;  %v1597_v47 = vpop.f32.mrb[8].mxu0 }
 0x267   : > { %v1599_v48 = vpop.f32.mrb[9].mxu0 }
 0x268   : > { %v1601_v49 = vpop.f32.mrb[10].mxu0  ;;  %v681_v50 = vmax.f32 %v1597_v47, %v1599_v48 }
 0x269   : > { %v1605_v51 = vpop.f32.mrb[11].mxu0 }
 0x26a   : > { %682 = vmax.xlane.f32.xlu1 %v681_v50  ;;  %v684_v52 = vmax.f32 %v1601_v49, %v1605_v51 }
 0x26e   : > { %685 = vmax.xlane.f32.xlu1 %v684_v52  ;;  %v1609_v53 = vpop.f32.mrb[12].mxu0 }
 0x26f   : > { %v1611_v54 = vpop.f32.mrb[13].mxu0 }
 0x270   : > { %v1613_v55 = vpop.f32.mrb[14].mxu0  ;;  %v687_v56 = vmax.f32 %v1609_v53, %v1611_v54 }
 0x271   : > { %v1617_v57 = vpop.f32.mrb[15].mxu0 }
 0x272   : > { %688 = vmax.xlane.f32.xlu1 %v687_v56  ;;  %v690_v58 = vmax.f32 %v1613_v55, %v1617_v57 }
 0x276   : > { %691 = vmax.xlane.f32.xlu1 %v690_v58  ;;  %v1621_v59 = vpop.f32.mrb[16].mxu0 }
 0x277   : > { %v1623_v60 = vpop.f32.mrb[17].mxu0 }
 0x278   : > { %v1625_v61 = vpop.f32.mrb[18].mxu0  ;;  %v693_v62 = vmax.f32 %v1621_v59, %v1623_v60 }
 0x279   : > { %v1629_v63 = vpop.f32.mrb[19].mxu0 }
 0x27a   : > { %694 = vmax.xlane.f32.xlu1 %v693_v62  ;;  %v696_v0 = vmax.f32 %v1625_v61, %v1629_v63 }
 0x27e   : > { %697 = vmax.xlane.f32.xlu1 %v696_v0  ;;  %v1633_v1 = vpop.f32.mrb[20].mxu0 }
 0x27f   : > { %v1635_v2 = vpop.f32.mrb[21].mxu0 }
 0x280   : > { %v1637_v3 = vpop.f32.mrb[22].mxu0  ;;  %v699_v4 = vmax.f32 %v1633_v1, %v1635_v2 }
 0x281   : > { %v1641_v5 = vpop.f32.mrb[23].mxu0 }
 0x282   : > { %700 = vmax.xlane.f32.xlu1 %v699_v4  ;;  %v702_v6 = vmax.f32 %v1637_v3, %v1641_v5 }
 0x286   : > { %703 = vmax.xlane.f32.xlu1 %v702_v6  ;;  %v1645_v7 = vpop.f32.mrb[24].mxu0 }
 0x287   : > { %v1647_v8 = vpop.f32.mrb[25].mxu0 }
 0x288   : > { %v1649_v9 = vpop.f32.mrb[26].mxu0  ;;  %v705_v10 = vmax.f32 %v1645_v7, %v1647_v8 }
 0x289   : > { %v1653_v11 = vpop.f32.mrb[27].mxu0 }
 0x28a   : > { %706 = vmax.xlane.f32.xlu1 %v705_v10  ;;  %v708_v12 = vmax.f32 %v1649_v9, %v1653_v11 }
 0x28c   : > { %709 = vmax.xlane.f32.xlu0 %v708_v12 }
 0x28e   : > { %v1657_v13 = vpop.f32.mrb[28].mxu0 }
 0x28f   : > { %v1659_v14 = vpop.f32.mrb[29].mxu0 }
 0x290   : > { %v1661_v15 = vpop.f32.mrb[30].mxu0  ;;  %v711_v16 = vmax.f32 %v1657_v13, %v1659_v14 }
 0x291   : > { %v1665_v17 = vpop.f32.mrb[31].mxu0 }
 0x292   : > { %712 = vmax.xlane.f32.xlu1 %v711_v16  ;;  %v714_v18 = vmax.f32 %v1661_v15, %v1665_v17 }
 0x294   : > { %715 = vmax.xlane.f32.xlu0 %v714_v18 }
 0x2e7   : > { %v671_v21 = vpop.xlane.xlu0 %670 }
 0x2e8   : > { %v717_v22 = vsub.f32 %v1573_v35, %v671_v21  ;;  %v718_v23 = vsub.f32 %v1575_v36, %v671_v21 }
 0x2e9   : > { %v674_v24 = vpop.xlane.xlu1 %673 }
 0x2ea   : > { %v749_v25 = vmul.f32 1.442695, %v717_v22  ;;  %v751_v26 = vmul.f32 1.442695, %v718_v23  ;;  %v719_v27 = vsub.f32 %v1577_v37, %v674_v24  ;;  %v720_v28 = vsub.f32 %v1581_v39, %v674_v24 }
 0x2ec   : > { %1210 = vpow2.f32 %v749_v25  ;;  %v753_v29 = vmul.f32 1.442695, %v719_v27  ;;  %v755_v30 = vmul.f32 1.442695, %v720_v28 }
 0x2ed   : > { %1212 = vpow2.f32 %v751_v26 }
 0x2ee   : > { %1214 = vpow2.f32 %v753_v29 }
 0x2ef   : > { %1216 = vpow2.f32 %v755_v30  ;;  %v677_v31 = vpop.xlane.xlu1 %676 }
 0x2f0   : > { %v721_v32 = vsub.f32 %v1585_v41, %v677_v31  ;;  %v722_v33 = vsub.f32 %v1587_v42, %v677_v31 }
 0x2f2   : > { %v757_v34 = vmul.f32 1.442695, %v721_v32  ;;  %v759_v35 = vmul.f32 1.442695, %v722_v33 }
 0x2f3   : > { %v680_v36 = vpop.xlane.xlu1 %679 }
 0x2f4   : > { %v723_v38 = vsub.f32 %v1589_v43, %v680_v36  ;;  %v724_v37 = vsub.f32 %v1593_v45, %v680_v36  ;;  %1218 = vpow2.f32 %v757_v34 }
 0x2f5   : > { %1220 = vpow2.f32 %v759_v35 }
 0x2f6   : > { %v1211_v40 = vpop.eup %1210  ;;  %v761_v39 = vmul.f32 1.442695, %v723_v38  ;;  %v763_v44 = vmul.f32 1.442695, %v724_v37 }
 0x2f7   : > { %v1213_v46 = vpop.eup %1212  ;;  %v683_v50 = vpop.xlane.xlu1 %682 }
 0x2f8   : > { %v1215_v52 = vpop.eup %1214  ;;  %1222 = vpow2.f32 %v761_v39  ;;  %v725_v41 = vsub.f32 %v1597_v47, %v683_v50  ;;  %v726_v42 = vsub.f32 %v1599_v48, %v683_v50 }
 0x2f9   : > { %v1217_v56 = vpop.eup %1216  ;;  %1224 = vpow2.f32 %v763_v44  ;;  %v813_v58 = vpack.c.bf16 %v1215_v52, %v1211_v40 }
 0x2fa   : > { %v765_v62 = vmul.f32 1.442695, %v725_v41  ;;  %v814_v43 = vpack.c.bf16 %v1217_v56, %v1213_v46  ;;  %v767_v0 = vmul.f32 1.442695, %v726_v42 }
 0x2fb   : > { %v686_v45 = vpop.xlane.xlu1 %685 }
 0x2fc   : > { %v727_v4 = vsub.f32 %v1601_v49, %v686_v45  ;;  %v728_v6 = vsub.f32 %v1605_v51, %v686_v45  ;;  %856 = vmatprep.subr.bf16.mxu0 %v814_v43  ;;  %1099 = vmatprep.subr.bf16.mxu1 %v814_v43  ;;  %1226 = vpow2.f32 %v765_v62 }
 0x2fd   : > { %857 = vmatpush1.bf16.xpose.msra.mxu0 %v813_v58  ;;  %1107 = vmatpush1.bf16.xpose.msra.mxu1 %v813_v58  ;;  %1228 = vpow2.f32 %v767_v0 }
 0x2fe   : > { %v769_v10 = vmul.f32 1.442695, %v727_v4  ;;  %v771_v47 = vmul.f32 1.442695, %v728_v6  ;;  %v1219_v12 = vpop.eup %1218 }
 0x2ff   : > { %v689_v48 = vpop.xlane.xlu1 %688  ;;  %v1221_v19 = vpop.eup %1220 }
 0x300   : > { %1230 = vpow2.f32 %v769_v10  ;;  %v729_v16 = vsub.f32 %v1609_v53, %v689_v48  ;;  %v730_v18 = vsub.f32 %v1611_v54, %v689_v48 }
 0x301   : > { %1232 = vpow2.f32 %v771_v47 }
 0x302   : > { %v1223_v49 = vpop.eup %1222  ;;  %v773_v20 = vmul.f32 1.442695, %v729_v16  ;;  %v775_v21 = vmul.f32 1.442695, %v730_v18 }
 0x303   : > { %v1225_v51 = vpop.eup %1224  ;;  %v692_v22 = vpop.xlane.xlu1 %691  ;;  %v815_v23 = vpack.c.bf16 %v1223_v49, %v1219_v12 }
 0x304   : > { %v731_v24 = vsub.f32 %v1613_v55, %v692_v22  ;;  %v732_v25 = vsub.f32 %v1617_v57, %v692_v22  ;;  %v816_v26 = vpack.c.bf16 %v1225_v51, %v1221_v19  ;;  %1234 = vpow2.f32 %v773_v20 }
 0x305   : > { %1236 = vpow2.f32 %v775_v21 }
 0x306   : > { %v777_v27 = vmul.f32 1.442695, %v731_v24  ;;  %v779_v28 = vmul.f32 1.442695, %v732_v25  ;;  %858 = vmatprep.subr.bf16.mxu0 %v816_v26  ;;  %1100 = vmatprep.subr.bf16.mxu1 %v816_v26  ;;  %v1227_v54 = vpop.eup %1226 }
 0x307   : > { %859 = vmatpush1.bf16.xpose.msra.mxu0 %v815_v23  ;;  %1108 = vmatpush1.bf16.xpose.msra.mxu1 %v815_v23  ;;  %v695_v53 = vpop.xlane.xlu1 %694  ;;  %v1229_v31 = vpop.eup %1228 }
 0x308   : > { %1238 = vpow2.f32 %v777_v27  ;;  %v733_v29 = vsub.f32 %v1621_v59, %v695_v53  ;;  %v734_v30 = vsub.f32 %v1623_v60, %v695_v53 }
 0x309   : > { %1240 = vpow2.f32 %v779_v28 }
 0x30a   : > { %v1231_v55 = vpop.eup %1230  ;;  %v781_v57 = vmul.f32 1.442695, %v733_v29  ;;  %v783_v33 = vmul.f32 1.442695, %v734_v30 }
 0x30b   : > { %v1233_v32 = vpop.eup %1232  ;;  %v698_v34 = vpop.xlane.xlu1 %697  ;;  %v817_v35 = vpack.c.bf16 %v1231_v55, %v1227_v54 }
 0x30c   : > { %v735_v36 = vsub.f32 %v1625_v61, %v698_v34  ;;  %v736_v38 = vsub.f32 %v1629_v63, %v698_v34  ;;  %v818_v37 = vpack.c.bf16 %v1233_v32, %v1229_v31  ;;  %1242 = vpow2.f32 %v781_v57 }
 0x30d   : > { %1244 = vpow2.f32 %v783_v33 }
 0x30e   : > { %v785_v40 = vmul.f32 1.442695, %v735_v36  ;;  %v787_v39 = vmul.f32 1.442695, %v736_v38  ;;  %860 = vmatprep.subr.bf16.mxu0 %v818_v37  ;;  %1101 = vmatprep.subr.bf16.mxu1 %v818_v37  ;;  %v1235_v60 = vpop.eup %1234  ;;  %v498_v38 = vld [vmem:[#allocation2 + $0x40] sm:$0x11] }
 0x30f   : > { %861 = vmatpush1.bf16.xpose.msra.mxu0 %v817_v35  ;;  %1109 = vmatpush1.bf16.xpose.msra.mxu1 %v817_v35  ;;  %v701_v59 = vpop.xlane.xlu1 %700  ;;  %v1237_v50 = vpop.eup %1236  ;;  %v1202_v37 = vld [vmem:[#allocation2 + $0x30] ss:$8 sps:$4 sm:$0xff]  }
 0x310   : > { %1246 = vpow2.f32 %v785_v40  ;;  %v737_v44 = vsub.f32 %v1633_v1, %v701_v59  ;;  %v738_v46 = vsub.f32 %v1635_v2, %v701_v59  ;;  %v1207_v40 = vld [vmem:[#allocation2 + $0x20] ss:$8 sps:$4 sm:$0xff]   ;;  %v1077_v59 = vcombine.low %v498_v38, %v498_v38 }
 0x311   : > { %1248 = vpow2.f32 %v787_v39  ;;  %v1078_v39 = vcombine.high %v498_v38, %v498_v38 }
 0x312   : > { %v1239_v61 = vpop.eup %1238  ;;  %v789_v63 = vmul.f32 1.442695, %v737_v44  ;;  %v791_v41 = vmul.f32 1.442695, %v738_v46 }
 0x313   : > { %v1241_v52 = vpop.eup %1240  ;;  %v704_v42 = vpop.xlane.xlu1 %703  ;;  %v819_v56 = vpack.c.bf16 %v1239_v61, %v1235_v60 }
 0x314   : > { %v739_v58 = vsub.f32 %v1637_v3, %v704_v42  ;;  %v740_v62 = vsub.f32 %v1641_v5, %v704_v42  ;;  %v820_v43 = vpack.c.bf16 %v1241_v52, %v1237_v50  ;;  %1250 = vpow2.f32 %v789_v63 }
 0x315   : > { %1252 = vpow2.f32 %v791_v41 }
 0x316   : > { %v793_v0 = vmul.f32 1.442695, %v739_v58  ;;  %v795_v45 = vmul.f32 1.442695, %v740_v62  ;;  %862 = vmatprep.subr.bf16.mxu0 %v820_v43  ;;  %1102 = vmatprep.subr.bf16.mxu1 %v820_v43  ;;  %v1243_v2 = vpop.eup %1242  ;;  %v922_v62 = vlaneseq }
 0x317   : > { %863 = vmatpush1.bf16.xpose.msra.mxu0 %v819_v56  ;;  %1110 = vmatpush1.bf16.xpose.msra.mxu1 %v819_v56  ;;  %v707_v1 = vpop.xlane.xlu1 %706  ;;  %v1245_v10 = vpop.eup %1244 }
 0x318   : > { %1254 = vpow2.f32 %v793_v0  ;;  %v741_v4 = vsub.f32 %v1645_v7, %v707_v1  ;;  %v742_v6 = vsub.f32 %v1647_v8, %v707_v1  ;;  %v923_v0 = vshrl.u32 %v922_v62, 7 }
 0x319   : > { %1256 = vpow2.f32 %v795_v45  ;;  %v710_v3 = vpop.xlane.xlu0 %709  ;;  %v920_v45 = vstv %s913_s14  ;;  %s1282_s14 = scalar_lea.vmem %s1281_s13, 1024 }
 0x31a   : > { %v1247_v5 = vpop.eup %1246  ;;  %v797_v47 = vmul.f32 1.442695, %v741_v4  ;;  %v799_v48 = vmul.f32 1.442695, %v742_v6  ;;  %v743_v12 = vsub.f32 %v1649_v9, %v710_v3  ;;  %v744_v16 = vsub.f32 %v1653_v11, %v710_v3  ;;  %v918_v6 = vld [vmem:[%s915_s5 + $0x20] sm:$0xff]  ;;  %v919_v3 = vld [vmem:[%s915_s5 + $0x30] sm:$0xff]  ;;  %p1284_p5 = scmp.lt.s32.totalorder %s1282_s14, %s1276_s11 }
 0x31b   : > { %v1249_v18 = vpop.eup %1248  ;;  %v821_v19 = vpack.c.bf16 %v1247_v5, %v1243_v2  ;;  %v924_v1 = vsub.s32 0, %v923_v0  ;;  %v916_v5 = vld [vmem:[%s915_s5] sm:$0xff] }
 0x31c   : > { %1258 = vpow2.f32 %v797_v47  ;;  %v801_v49 = vmul.f32 1.442695, %v743_v12  ;;  %v803_v20 = vmul.f32 1.442695, %v744_v16  ;;  %v822_v51 = vpack.c.bf16 %v1249_v18, %v1245_v10  ;;  %v917_v47 = vld [vmem:[%s915_s5 + $0x10] sm:$0xff]  ;;  %p1285_p6 = por %p1284_p5, %p1283_p4 }
 0x31d   : > { %1260 = vpow2.f32 %v799_v48 }
 0x31e   : > { %1262 = vpow2.f32 %v801_v49  ;;  %864 = vmatprep.subr.bf16.mxu0 %v822_v51  ;;  %1103 = vmatprep.subr.bf16.mxu1 %v822_v51  ;;  %v1251_v8 = vpop.eup %1250  ;;  %p1286_p7 = pnand %p1285_p6, %p1279_p2 }
 0x31f   : > { %1264 = vpow2.f32 %v803_v20  ;;  %865 = vmatpush1.bf16.xpose.msra.mxu0 %v821_v19  ;;  %1111 = vmatpush1.bf16.xpose.msra.mxu1 %v821_v19  ;;  %v713_v7 = vpop.xlane.xlu1 %712  ;;  %v1253_v11 = vpop.eup %1252 }
 0x320   : > { %v745_v21 = vsub.f32 %v1657_v13, %v713_v7  ;;  %v746_v9 = vsub.f32 %v1659_v14, %v713_v7 }
 0x321   : > { %v716_v22 = vpop.xlane.xlu0 %715 }
 0x322   : > { %v1255_v23 = vpop.eup %1254  ;;  %v805_v24 = vmul.f32 1.442695, %v745_v21  ;;  %v807_v25 = vmul.f32 1.442695, %v746_v9  ;;  %v747_v26 = vsub.f32 %v1661_v15, %v716_v22  ;;  %v748_v27 = vsub.f32 %v1665_v17, %v716_v22 }
 0x323   : > { %v1257_v28 = vpop.eup %1256  ;;  %v823_v53 = vpack.c.bf16 %v1255_v23, %v1251_v8 }
 0x324   : > { %1266 = vpow2.f32 %v805_v24  ;;  %v809_v54 = vmul.f32 1.442695, %v747_v26  ;;  %v811_v29 = vmul.f32 1.442695, %v748_v27  ;;  %v824_v30 = vpack.c.bf16 %v1257_v28, %v1253_v11 }
 0x325   : > { %1268 = vpow2.f32 %v807_v25 }
 0x326   : > { %v1259_v31 = vpop.eup %1258  ;;  %1270 = vpow2.f32 %v809_v54  ;;  %866 = vmatprep.subr.bf16.mxu0 %v824_v30  ;;  %1104 = vmatprep.subr.bf16.mxu1 %v824_v30 }
 0x327   : > { %v1261_v13 = vpop.eup %1260  ;;  %1272 = vpow2.f32 %v811_v29  ;;  %867 = vmatpush1.bf16.xpose.msra.mxu0 %v823_v53  ;;  %1112 = vmatpush1.bf16.xpose.msra.mxu1 %v823_v53 }
 0x328   : > { %v1263_v14 = vpop.eup %1262 }
 0x329   : > { %v1265_v55 = vpop.eup %1264  ;;  %v825_v15 = vpack.c.bf16 %v1263_v14, %v1259_v31 }
 0x32a   : > { %v826_v57 = vpack.c.bf16 %v1265_v55, %v1261_v13 }
 0x32c   : > { %868 = vmatprep.subr.bf16.mxu0 %v826_v57  ;;  %1105 = vmatprep.subr.bf16.mxu1 %v826_v57 }
 0x32e   : > { %v1267_v17 = vpop.eup %1266 }
 0x32f   : > { %v1269_v32 = vpop.eup %1268  ;;  %869 = vmatpush1.bf16.xpose.msra.mxu0 %v825_v15  ;;  %1113 = vmatpush1.bf16.xpose.msra.mxu1 %v825_v15 }
 0x330   : > { %v1271_v33 = vpop.eup %1270 }
 0x331   : > { %v1273_v34 = vpop.eup %1272  ;;  %v827_v35 = vpack.c.bf16 %v1271_v33, %v1267_v17 }
 0x332   : > { %v828_v36 = vpack.c.bf16 %v1273_v34, %v1269_v32 }
 0x334   : > { %870 = vmatprep.subr.bf16.mxu0 %v828_v36  ;;  %1106 = vmatprep.subr.bf16.mxu1 %v828_v36 }
 0x337   : > { %871 = vmatpush1.bf16.xpose.msra.mxu0 %v827_v35  ;;  %1114 = vmatpush1.bf16.xpose.msra.mxu1 %v827_v35 }
 0x33e   : > { %897 = vmatmul.mubr.bf16.vlgmr.msra.gmra.mrb[0].mxu1 %v1202_v37  ;;  %889 = vmatmul.mubr.bf16.vlgmr.msra.gmra.mrb[32].mxu0 %v1207_v40 }
 0x33f   : > { %904 = vmatprep.mubr.bf16.mxu1 %v1078_v39 }
 0x346   : > { %905 = vmatmul.mubr.bf16.gmra.mrb[4].mxu1 %v1077_v59 }
 0x411   : > { %v898_v60 = vpop.f32.mrb[0].mxu1  ;;  %v890_v44 = vpop.f32.mrb[32].mxu0 }
 0x412   : > { %v900_v46 = vpop.f32.mrb[1].mxu1  ;;  %v892_v50 = vpop.f32.mrb[33].mxu0 }
 0x413   : > { %v901_v61 = vpop.f32.mrb[2].mxu1  ;;  %v893_v63 = vpop.f32.mrb[34].mxu0 }
 0x414   : > { %v903_v52 = vpop.f32.mrb[3].mxu1  ;;  %v895_v41 = vpop.f32.mrb[35].mxu0 }
 0x419   : > { %v906_v42 = vpop.f32.mrb[4].mxu1 }
 0x41a   : > { %1274 = vrcp.f32 %v906_v42  ;;  %v908_v56 = vpop.f32.mrb[5].mxu1 }
 0x41b   : > { %v909_v58 = vpop.f32.mrb[6].mxu1 }
 0x41c   : > { %v910_v43 = vpop.f32.mrb[7].mxu1 }
 0x424   : > { %v1275_v2 = vpop.eup %1274 }
 0x425   : > { %v921_v4 = vmul.f32 %v1275_v2, %v920_v45 }
 0x427   : > { %v925_v10 = vrot.slane %v921_v4, %v924_v1 }
 0x429   : > { %v926_v48 = vmul.f32 %v925_v10, %v890_v44  ;;  %v928_v12 = vmul.f32 %v925_v10, %v898_v60  ;;  %v929_v16 = vmul.f32 %v925_v10, %v901_v61  ;;  %v927_v18 = vmul.f32 %v925_v10, %v893_v63 }
 0x42b   : > { %v930_v19 = vadd.f32 %v926_v48, %v916_v5  ;;  %v932_v49 = vadd.f32 %v928_v12, %v918_v6  ;;  %v933_v20 = vadd.f32 %v929_v16, %v919_v3  ;;  %v931_v51 = vadd.f32 %v927_v18, %v917_v47 }
 0x42d   : > { %934 = vst [vmem:[%s1487_s16] sm:$0xff] %v930_v19  ;;  %936 = vst [vmem:[%s1487_s16 + $0x10] sm:$0xff] %v932_v49 }
 0x42e   : > { %937 = vst [vmem:[%s1487_s16 + $0x18] sm:$0xff] %v933_v20  ;;  %935 = vst [vmem:[%s1487_s16 + $0x8] sm:$0xff] %v931_v51 }
 0x42f   : > { %1289 = shalt.err (!%p1286_p7)
}
 0x430   : > { %s1290_s9 = scalar_lea.hbm %s1709_s15, 512  ;;  %s1294_s25 = scalar_lea.hbm %s1775_s4, 2048 }
 0x431   : > { %p1291_p9 = scmp.ne.s32.totalorder %s1709_s15, %s1290_s9  ;;  %p1295_p12 = scmp.lt.u32.totalorder %s1709_s15, %s1775_s4 }
 0x432   : > { %p1296_p13 = scmp.lt.u32.totalorder %s1294_s25, %s1290_s9  ;;  %p1298_p1 = scmp.lt.u32.totalorder %s1290_s9, %s1709_s15 }
 0x433   : > { %p1292_p10 = pnand %p1291_p9, %p1457_p3 }
 0x434   : > { %p1297_p0 = por %p1296_p13, %p1295_p12 }
 0x435   : > { %p1293_p11 = pneg %p1292_p10 }
 0x436   : > { %p1299_p2 = por %p1298_p1, %p1297_p0 }
 0x438   : > { %p1300_p4 = pnand %p1299_p2, %p1293_p11 }
 0x43a   : > { %1303 = shalt.err (!%p1300_p4)
}
 0x43b   : > { %s1375_s6 = smov 128   ;;  %s1376_s20 = smov 256  }
 0x43c   : > { %s1377_s21 = smov 8  }
 0x43d   : > { %1115 = dma.vmem_to_hbm [thread:$0]  (%p1457_p3), %s1711_s7, 512, %s1709_s15, %s1719_s10, %s1375_s6, %s1376_s20, %s1377_s21  }
 0x43e PF: > { %p1121_p5 = scmp.ge.s32.totalorder %s1370_s24, 2  ;;  %s968_s11 = sand.u32 1, %s1342_s17  }
 0x43f   : > { %s969_s12 = scalar_lea.sflag [#allocation5], %s968_s11 }
 0x440   : > { %p1118_p6 = pnand %p1121_p5, %p1466_p8 }
 0x442   : > { %1337 = dma.done.wait (!%p1118_p6), %s969_s12, 512  }
 0x443   : > { %1339 = vsyncadd (!%p1118_p6), %s969_s12, 4294966784  ;;  %s18_s24 = sadd.s32 1, %s1370_s24   ;;  %s1782_s17 = smov %s1346_s18 }
 0x444   : > { %p15_p7 = scmp.ge.s32.totalorder %s18_s24, 6   ;;  %s1783_s18 = smov %s1350_s19 }
 0x445   : > { %s1784_s19 = smov %s1475_s8  ;;  %s1785_s20 = smov %s1362_s22 }
 0x446   : > { %s1786_s21 = smov %s1366_s23  ;;  %s1787_s22 = smov %s1790_s26 }
 0x447   : > { %s1788_s23 = smov %s1794_s27  ;;  %17 = sbr.rel (!%p15_p7) target bundleno = 7 (0x7), region = 77 }
 0x44e   :  { %974 = vsyncpa [#allocation5], 1 }
 0x44f   :  { %976 = vsyncpa [#allocation5 + $0x1], 1 }

</bundles_post_ra>
